<compile_context>
chip_gen: v6e
topology: v6e:2x2x1
jax: 0.10.0
libtpu: 0.0.40
codegen_flags: <defaults>
</compile_context>

<pallas_src>
import functools

import jax
import jax.numpy as jnp
from jax.experimental import pallas as pl
from jax.experimental.pallas import tpu as pltpu


def _conv_bn_relu_pool_kernel(x_ref, halo_ref, w_ref, b_ref, o_ref, *,
                              TH, W, Cin, Cout, Cpad, pool, pool_type):
    # x_ref:    (1, TH,  W+2, Cin)  padded-NHWC body rows of this strip (compute dtype)
    # halo_ref: (1, 2,   W+2, Cin)  next two padded rows (halo)
    # w_ref:    (9*Cin, Cpad)       BN-scale-folded weights, K order = (kw, kh, cin)
    # b_ref:    (1, Cpad)           BN bias (f32)
    # o_ref:    (1, TH//pool, W//pool, Cout)  compute dtype, exact channels
    x = jnp.concatenate([x_ref[0], halo_ref[0]], axis=0)          # (TH+2, W+2, Cin)

    # ---- im2col entirely in compute dtype: one fused LHS, one MXU matmul ----
    # NOTE: for Cin % 128 != 0 the lane concats are lane-misaligned; if the
    # XLU / store slots saturate in the bundle, switch to a kw-only concat
    # (K=3*Cin) with 3 accumulated matmuls over kh.
    bands = jnp.concatenate([x[kh:kh + TH] for kh in range(3)], axis=-1)        # (TH, W+2, 3*Cin)
    cols = jnp.concatenate([bands[:, kw:kw + W] for kw in range(3)], axis=-1)   # (TH, W, 9*Cin)
    lhs = cols.reshape(TH * W, 9 * Cin)

    acc = jnp.dot(lhs, w_ref[...], preferred_element_type=jnp.float32)          # (TH*W, Cpad) f32

    # ---- BN bias (scale already folded into weights) + ReLU, in f32 ---------
    y = jnp.maximum(acc + b_ref[...], 0.0)

    # ---- pooling -------------------------------------------------------------
    THp, Wp = TH // pool, W // pool
    # H-pooling first: leading-dim reshape + index (layout-free, pure VPU).
    z = y.reshape(THp, pool, W, Cpad)
    h_parts = [z[:, dh] for dh in range(pool)]                    # each (THp, W, Cpad)

    def w_fold(t):
        # sublane->lane fold: W-pool partners become 128-aligned lane blocks.
        tw = t.reshape(THp, Wp, pool * Cpad)
        return [tw[:, :, dj * Cpad:(dj + 1) * Cpad] for dj in range(pool)]

    if pool_type == 'avg':
        out = (functools.reduce(jnp.add, w_fold(functools.reduce(jnp.add, h_parts)))
               * (1.0 / (pool * pool)))
    elif pool_type == 'max':
        out = functools.reduce(jnp.maximum,
                               w_fold(functools.reduce(jnp.maximum, h_parts)))
    elif pool_type == 'avg+max':
        out = (functools.reduce(jnp.add, w_fold(functools.reduce(jnp.add, h_parts)))
               * (1.0 / (pool * pool))
               + functools.reduce(jnp.maximum,
                                  w_fold(functools.reduce(jnp.maximum, h_parts))))
    else:
        raise ValueError('Incorrect argument!')

    # Exact-channel store: no Cpad write amplification, bf16 writeback.
    o_ref[...] = out[:, :, :Cout][None].astype(o_ref.dtype)


def _vmem_limits():
    """Generation-aware scoped-VMEM limit + strip-sizing budget."""
    cap = 64 << 20                                   # conservative default (v7x per-TC VMEM)
    try:
        info = pltpu.get_tpu_info()
        cap = int(getattr(info, "vmem_capacity_bytes", cap)) or cap
    except Exception:
        pass
    limit = min(cap // 2, 96 << 20)                  # 64 MiB on 128-MiB chips, 32 MiB on v7x
    budget = limit // 2                              # headroom for compiler scratch / spills
    return limit, budget


def _choose_strip_height(H, W, Cin, Cout, Cpad, pool, N, itemsize, budget_bytes,
                         min_grid_steps=4):
    """Largest strip height (divides H, multiple of pool) whose per-step live
    VMEM fits the budget, while keeping N*S >= min_grid_steps grid steps so
    both v7x TensorCores get >= 2 pipelined steps each."""
    lane = lambda c: max(128, ((c + 127) // 128) * 128)      # VMEM lane padding
    sub = lambda r: ((r + 7) // 8) * 8                       # VMEM sublane padding
    w2 = W + 2

    def vmem_cost(th):
        thp, wp = th // pool, W // pool
        c = 0
        c += 2 * th * sub(w2) * lane(Cin) * itemsize         # 2x body strip block
        c += 2 * 2 * sub(w2) * lane(Cin) * itemsize          # 2x halo block
        c += 2 * sub(9 * Cin) * Cpad * itemsize              # 2x weight block
        c += 2 * thp * sub(wp) * lane(Cout) * itemsize       # 2x output block
        c += (th + 2) * sub(w2) * lane(Cin) * itemsize       # concatenated strip
        c += th * sub(w2) * lane(3 * Cin) * itemsize         # bands (live with cols)
        c += th * W * lane(9 * Cin) * itemsize               # im2col LHS
        c += int(2.5 * th * W * Cpad * 4)                    # f32 acc + pooling temps
        return c

    cands = [th for th in range(pool, H + 1, pool) if H % th == 0]
    fits = [th for th in cands if vmem_cost(th) <= budget_bytes] or [cands[0]]
    enough_steps = [th for th in fits if N * (H // th) >= min_grid_steps]
    return max(enough_steps) if enough_steps else max(fits)


def conv_block_3x3(x_nchw, w_oihw, bn_gamma, bn_beta, bn_mean, bn_var, *,
                   eps=1e-5, pool_size=2, pool_type='avg',
                   compute_dtype=jnp.bfloat16):
    if pool_type not in ('avg', 'max', 'avg+max'):
        raise ValueError('Incorrect argument!')
    N, Cin, H, W = x_nchw.shape
    Cout = w_oihw.shape[0]
    assert w_oihw.shape == (Cout, Cin, 3, 3)
    assert H % pool_size == 0 and W % pool_size == 0

    # Lane-dense matmul N. NOTE(v6e/v7x): for large Cout a 256-multiple would
    # fill the 256-wide MXU better, at the cost of padded FLOPs.
    Cpad = max(128, ((Cout + 127) // 128) * 128)

    # Fold BN (eval mode) into the conv weights; only a bias add stays in-kernel.
    scale = (bn_gamma / jnp.sqrt(bn_var + eps)).astype(jnp.float32)      # (Cout,)
    bias = (bn_beta - bn_mean * scale).astype(jnp.float32)               # (Cout,)
    w_folded = w_oihw.astype(jnp.float32) * scale[:, None, None, None]   # (O,I,3,3)
    # (O, I, KH, KW) -> (KW, KH, I, O) -> (9*Cin, Cout); K index = kw*3*Cin + kh*Cin + cin
    w_k = jnp.transpose(w_folded, (3, 2, 1, 0)).reshape(9 * Cin, Cout)
    w_k = jnp.pad(w_k, ((0, 0), (0, Cpad - Cout))).astype(compute_dtype)
    bias_p = jnp.pad(bias, (0, Cpad - Cout)).reshape(1, Cpad).astype(jnp.float32)

    # Layout glue (cast to compute dtype first so these passes move half the bytes).
    x_nhwc = jnp.transpose(x_nchw.astype(compute_dtype), (0, 2, 3, 1))   # (N,H,W,Cin)
    x_pad = jnp.pad(x_nhwc, ((0, 0), (1, 1), (1, 1), (0, 0)))            # (N,H+2,W+2,Cin)

    itemsize = jnp.dtype(compute_dtype).itemsize
    vmem_limit, vmem_budget = _vmem_limits()
    TH = _choose_strip_height(H, W, Cin, Cout, Cpad, pool_size, N, itemsize, vmem_budget)
    S = H // TH

    # Tiny halo side input (2 rows per strip) instead of duplicating whole strips.
    halo = jnp.concatenate(
        [x_pad[:, s * TH + TH: s * TH + TH + 2] for s in range(S)], axis=1)  # (N,2S,W+2,Cin)

    THp, Wp, Hp = TH // pool_size, W // pool_size, H // pool_size
    kernel = functools.partial(_conv_bn_relu_pool_kernel,
                               TH=TH, W=W, Cin=Cin, Cout=Cout, Cpad=Cpad,
                               pool=pool_size, pool_type=pool_type)

    out = pl.pallas_call(
        kernel,
        out_shape=jax.ShapeDtypeStruct((N, Hp, Wp, Cout), compute_dtype),
        grid_spec=pltpu.PrefetchScalarGridSpec(
            num_scalar_prefetch=0,
            grid=(N, S),
            in_specs=[
                pl.BlockSpec((1, TH, W + 2, Cin), lambda n, s: (n, s, 0, 0)),
                pl.BlockSpec((1, 2, W + 2, Cin), lambda n, s: (n, s, 0, 0)),
                pl.BlockSpec((9 * Cin, Cpad), lambda n, s: (0, 0)),
                pl.BlockSpec((1, Cpad), lambda n, s: (0, 0)),
            ],
            out_specs=pl.BlockSpec((1, THp, Wp, Cout), lambda n, s: (n, s, 0, 0)),
        ),
        compiler_params=pltpu.CompilerParams(
            dimension_semantics=("parallel", "parallel"),
            vmem_limit_bytes=int(vmem_limit)),
    )(x_pad, halo, w_k, bias_p)

    return jnp.transpose(out, (0, 3, 1, 2))               # NHWC -> NCHW


def _reference(x_nchw, w_oihw, bn_gamma, bn_beta, bn_mean, bn_var,
               *, eps=1e-5, pool_size=2, pool_type='avg'):
    # Pure-JAX f32 reference (XLA conv) for correctness checking.
    y = jax.lax.conv_general_dilated(
        x_nchw, w_oihw, window_strides=(1, 1), padding=((1, 1), (1, 1)),
        dimension_numbers=('NCHW', 'OIHW', 'NCHW'))
    scale = bn_gamma / jnp.sqrt(bn_var + eps)
    bias = bn_beta - bn_mean * scale
    y = y * scale[None, :, None, None] + bias[None, :, None, None]
    y = jnp.maximum(y, 0.0)
    N, C, H, W = y.shape
    yr = y.reshape(N, C, H // pool_size, pool_size, W // pool_size, pool_size)
    if pool_type == 'avg':
        return jnp.mean(yr, axis=(3, 5))
    if pool_type == 'max':
        return jnp.max(yr, axis=(3, 5))
    return jnp.mean(yr, axis=(3, 5)) + jnp.max(yr, axis=(3, 5))


if __name__ == "__main__":
    key = jax.random.PRNGKey(0)
    N, Cin, Cout, H, W = 2, 4, 8, 16, 16

    k_x, k_w = jax.random.split(key)
    x = jax.random.normal(k_x, (N, Cin, H, W), dtype=jnp.float32)

    # Deterministic "init_layer" (Xavier-uniform style) conv weight.
    fan_in, fan_out = Cin * 9, Cout * 9
    limit = (6.0 / (fan_in + fan_out)) ** 0.5
    w = jax.random.uniform(k_w, (Cout, Cin, 3, 3), jnp.float32, -limit, limit)

    # init_bn: gamma=1, beta=0; inference running stats mean=0, var=1.
    gamma = jnp.ones((Cout,), jnp.float32)
    beta = jnp.zeros((Cout,), jnp.float32)
    mean = jnp.zeros((Cout,), jnp.float32)
    var = jnp.ones((Cout,), jnp.float32)

    ref = _reference(x, w, gamma, beta, mean, var, pool_size=2, pool_type='avg')

    # Main (perf) path: bf16 activations/weights/output, f32 accumulation.
    out = conv_block_3x3(x, w, gamma, beta, mean, var,
                         pool_size=2, pool_type='avg')
    out = jax.block_until_ready(out)
    assert out.shape == (N, Cout, H // 2, W // 2)
    assert jnp.allclose(out, ref, atol=2e-2, rtol=2e-2)     # bf16-rounding tolerance

    # Exact-precision sanity check: same kernel, f32 compute dtype.
    out32 = conv_block_3x3(x, w, gamma, beta, mean, var,
                           pool_size=2, pool_type='avg',
                           compute_dtype=jnp.float32)
    out32 = jax.block_until_ready(out32)
    assert jnp.allclose(out32, ref, atol=1e-4, rtol=1e-4)

    # Other pooling modes (bf16 path).
    for pt in ('max', 'avg+max'):
        o = jax.block_until_ready(
            conv_block_3x3(x, w, gamma, beta, mean, var, pool_size=2, pool_type=pt))
        r = _reference(x, w, gamma, beta, mean, var, pool_size=2, pool_type=pt)
        assert jnp.allclose(o, r, atol=2e-2, rtol=2e-2)

    print("KERNEL_OK")
</pallas_src>

<mosaic_0001>
module attributes {stable_mosaic.version = 11 : i64} {
  func.func @_conv_bn_relu_pool_kernel(%arg0: i32, %arg1: i32, %arg2: memref<1x8x18x4xbf16, #tpu.memory_space<vmem>>, %arg3: memref<1x2x18x4xbf16, #tpu.memory_space<vmem>>, %arg4: memref<36x128xbf16, #tpu.memory_space<vmem>>, %arg5: memref<1x128xf32, #tpu.memory_space<vmem>>, %arg6: memref<1x4x8x8xbf16, #tpu.memory_space<vmem>>) attributes {dimension_semantics = [#tpu.dimension_semantics<parallel>, #tpu.dimension_semantics<parallel>], iteration_bounds = array<i64: 2, 2>, scalar_prefetch = 0 : i64, scratch_operands = 0 : i64, tpu.core_type = #tpu.core_type<tc>, window_params = [{transform_indices = @transform_0, window_bounds = array<i64: 1, 8, 18, 4>}, {transform_indices = @transform_1, window_bounds = array<i64: 1, 2, 18, 4>}, {pipeline_mode = #tpu.pipeline_mode<synchronous>, transform_indices = @transform_2, window_bounds = array<i64: 36, 128>}, {pipeline_mode = #tpu.pipeline_mode<synchronous>, transform_indices = @transform_3, window_bounds = array<i64: 1, 128>}, {transform_indices = @transform_4, window_bounds = array<i64: 1, 4, 8, 8>}]} {
    %c0 = arith.constant 0 : index
    %c0_0 = arith.constant 0 : index
    %c0_1 = arith.constant 0 : index
    %c0_2 = arith.constant 0 : index
    %0 = vector.load %arg2[%c0, %c0_0, %c0_1, %c0_2] : memref<1x8x18x4xbf16, #tpu.memory_space<vmem>>, vector<1x8x18x4xbf16>
    %1 = vector.shape_cast %0 : vector<1x8x18x4xbf16> to vector<8x18x4xbf16>
    %c0_3 = arith.constant 0 : index
    %c0_4 = arith.constant 0 : index
    %c0_5 = arith.constant 0 : index
    %c0_6 = arith.constant 0 : index
    %2 = vector.load %arg3[%c0_3, %c0_4, %c0_5, %c0_6] : memref<1x2x18x4xbf16, #tpu.memory_space<vmem>>, vector<1x2x18x4xbf16>
    %3 = vector.shape_cast %2 : vector<1x2x18x4xbf16> to vector<2x18x4xbf16>
    %4 = tpu.concatenate %1, %3 in 0 : vector<8x18x4xbf16>, vector<2x18x4xbf16> -> vector<10x18x4xbf16>
    %5 = vector.extract_strided_slice %4 {offsets = [0, 0, 0], sizes = [8, 18, 4], strides = [1, 1, 1]} : vector<10x18x4xbf16> to vector<8x18x4xbf16>
    %6 = vector.extract_strided_slice %4 {offsets = [1, 0, 0], sizes = [8, 18, 4], strides = [1, 1, 1]} : vector<10x18x4xbf16> to vector<8x18x4xbf16>
    %7 = vector.extract_strided_slice %4 {offsets = [2, 0, 0], sizes = [8, 18, 4], strides = [1, 1, 1]} : vector<10x18x4xbf16> to vector<8x18x4xbf16>
    %8 = tpu.concatenate %5, %6, %7 in 2 : vector<8x18x4xbf16>, vector<8x18x4xbf16>, vector<8x18x4xbf16> -> vector<8x18x12xbf16>
    %9 = vector.extract_strided_slice %8 {offsets = [0, 0, 0], sizes = [8, 16, 12], strides = [1, 1, 1]} : vector<8x18x12xbf16> to vector<8x16x12xbf16>
    %10 = vector.extract_strided_slice %8 {offsets = [0, 1, 0], sizes = [8, 16, 12], strides = [1, 1, 1]} : vector<8x18x12xbf16> to vector<8x16x12xbf16>
    %11 = vector.extract_strided_slice %8 {offsets = [0, 2, 0], sizes = [8, 16, 12], strides = [1, 1, 1]} : vector<8x18x12xbf16> to vector<8x16x12xbf16>
    %12 = tpu.concatenate %9, %10, %11 in 2 : vector<8x16x12xbf16>, vector<8x16x12xbf16>, vector<8x16x12xbf16> -> vector<8x16x36xbf16>
    %13 = vector.shape_cast %12 : vector<8x16x36xbf16> to vector<128x36xbf16>
    %c0_7 = arith.constant 0 : index
    %c0_8 = arith.constant 0 : index
    %14 = vector.load %arg4[%c0_7, %c0_8] : memref<36x128xbf16, #tpu.memory_space<vmem>>, vector<36x128xbf16>
    %cst = arith.constant dense<0.000000e+00> : vector<128x128xf32>
    %15 = tpu.matmul %13, %14, %cst {dimension_numbers = #tpu.dot_dimension_numbers<[1], [0], [0], [1], [0, 0, 1, 1], [], []>} : vector<128x36xbf16>, vector<36x128xbf16>, vector<128x128xf32> -> vector<128x128xf32>
    %c0_9 = arith.constant 0 : index
    %c0_10 = arith.constant 0 : index
    %16 = vector.load %arg5[%c0_9, %c0_10] : memref<1x128xf32, #tpu.memory_space<vmem>>, vector<1x128xf32>
    %17 = vector.broadcast %16 : vector<1x128xf32> to vector<128x128xf32>
    %18 = arith.addf %15, %17 : vector<128x128xf32>
    %cst_11 = arith.constant 0.000000e+00 : f32
    %19 = vector.broadcast %cst_11 : f32 to vector<128x128xf32>
    %20 = arith.maximumf %18, %19 : vector<128x128xf32>
    %21 = vector.shape_cast %20 : vector<128x128xf32> to vector<4x2x16x128xf32>
    %22 = vector.extract_strided_slice %21 {offsets = [0, 0, 0, 0], sizes = [4, 1, 16, 128], strides = [1, 1, 1, 1]} : vector<4x2x16x128xf32> to vector<4x1x16x128xf32>
    %23 = vector.shape_cast %22 : vector<4x1x16x128xf32> to vector<4x16x128xf32>
    %24 = vector.extract_strided_slice %21 {offsets = [0, 1, 0, 0], sizes = [4, 1, 16, 128], strides = [1, 1, 1, 1]} : vector<4x2x16x128xf32> to vector<4x1x16x128xf32>
    %25 = vector.shape_cast %24 : vector<4x1x16x128xf32> to vector<4x16x128xf32>
    %26 = arith.addf %23, %25 : vector<4x16x128xf32>
    %27 = vector.shape_cast %26 : vector<4x16x128xf32> to vector<4x8x256xf32>
    %28 = vector.extract_strided_slice %27 {offsets = [0, 0, 0], sizes = [4, 8, 128], strides = [1, 1, 1]} : vector<4x8x256xf32> to vector<4x8x128xf32>
    %29 = vector.extract_strided_slice %27 {offsets = [0, 0, 128], sizes = [4, 8, 128], strides = [1, 1, 1]} : vector<4x8x256xf32> to vector<4x8x128xf32>
    %30 = arith.addf %28, %29 : vector<4x8x128xf32>
    %cst_12 = arith.constant 2.500000e-01 : f32
    %31 = vector.broadcast %cst_12 : f32 to vector<4x8x128xf32>
    %32 = arith.mulf %30, %31 : vector<4x8x128xf32>
    %33 = vector.extract_strided_slice %32 {offsets = [0, 0, 0], sizes = [4, 8, 8], strides = [1, 1, 1]} : vector<4x8x128xf32> to vector<4x8x8xf32>
    %34 = vector.shape_cast %33 : vector<4x8x8xf32> to vector<1x4x8x8xf32>
    %35 = arith.truncf %34 : vector<1x4x8x8xf32> to vector<1x4x8x8xbf16>
    %c0_13 = arith.constant 0 : index
    %c0_14 = arith.constant 0 : index
    %c0_15 = arith.constant 0 : index
    %c0_16 = arith.constant 0 : index
    %36 = vector.load %arg6[%c0_13, %c0_14, %c0_15, %c0_16] : memref<1x4x8x8xbf16, #tpu.memory_space<vmem>>, vector<1x4x8x8xbf16>
    tpu.vector_store %arg6[%c0_13, %c0_14, %c0_15, %c0_16], %35 {strides = array<i32>} : memref<1x4x8x8xbf16, #tpu.memory_space<vmem>>, vector<1x4x8x8xbf16>,
    return
  }
  func.func @transform_0(%arg0: i32, %arg1: i32) -> (i32, i32, i32, i32) {
    %c0_i32 = arith.constant 0 : i32
    %c0_i32_0 = arith.constant 0 : i32
    %c0_i32_1 = arith.constant 0 : i32
    return %arg0, %arg1, %c0_i32, %c0_i32_0 : i32, i32, i32, i32
  }
  func.func @transform_1(%arg0: i32, %arg1: i32) -> (i32, i32, i32, i32) {
    %c0_i32 = arith.constant 0 : i32
    %c0_i32_0 = arith.constant 0 : i32
    %c0_i32_1 = arith.constant 0 : i32
    return %arg0, %arg1, %c0_i32, %c0_i32_0 : i32, i32, i32, i32
  }
  func.func @transform_2(%arg0: i32, %arg1: i32) -> (i32, i32) {
    %c0_i32 = arith.constant 0 : i32
    %c0_i32_0 = arith.constant 0 : i32
    %c0_i32_1 = arith.constant 0 : i32
    return %c0_i32, %c0_i32_0 : i32, i32
  }
  func.func @transform_3(%arg0: i32, %arg1: i32) -> (i32, i32) {
    %c0_i32 = arith.constant 0 : i32
    %c0_i32_0 = arith.constant 0 : i32
    %c0_i32_1 = arith.constant 0 : i32
    return %c0_i32, %c0_i32_0 : i32, i32
  }
  func.func @transform_4(%arg0: i32, %arg1: i32) -> (i32, i32, i32, i32) {
    %c0_i32 = arith.constant 0 : i32
    %c0_i32_0 = arith.constant 0 : i32
    %c0_i32_1 = arith.constant 0 : i32
    return %arg0, %arg1, %c0_i32, %c0_i32_0 : i32, i32, i32, i32
  }
}

</mosaic_0001>

<bundles_post_ra>
// kernel: tpu_custom_call.1
= control target key start
LH: loop header
LB: loop body
LE: loop exit
PB: predicated region body
PF: predicated region fallthrough
CT: control target
= control target key end

     0   :  { %9 = vsyncpa [#allocation3], 0  ;;  %s1930_s0 = inlined_call_operand.vmem [shape: bf16[2,18,18,4], index: 0, kind: input, shape index: {}]   ;;  %s1931_s1 = inlined_call_operand.vmem [shape: bf16[2,4,18,4], index: 1, kind: input, shape index: {}]   ;;  %s1932_s2 = inlined_call_operand.vmem [shape: bf16[36,128], index: 2, kind: input, shape index: {}]   ;;  %s1933_s3 = inlined_call_operand.vmem [shape: f32[1,128], index: 3, kind: input, shape index: {}]   ;;  %s1934_s4 = inlined_call_operand.hbm [shape: bf16[2,8,8,8], index: 4, kind: output, shape index: {}]  }
   0x1   :  { %11 = vsyncpa [#allocation3 + $0x1], 0  ;;  %s1470_s15 = smov 0   ;;  %s1472_s16 = smov 0  }
   0x2   :  { %s1474_s17 = smov 0   ;;  %s1476_s18 = smov 0  }
   0x3   :  { %s1478_s19 = smov 0   ;;  %s1480_s20 = smov 0  }
   0x4   :  { %s1482_s21 = smov 0   ;;  %s1484_s22 = smov 0  }
   0x5 LB: > { %s1151_s23 = sadd.s32 4294967295, %s1436_s22   ;;  %s1152_s24 = sadd.s32 4294967294, %s1436_s22   ;;  %s1436_s22 = sphi %s1484_s22, %s17_s22   ;;  %s1432_s21 = sphi %s1482_s21, %s1943_s21   ;;  %s1428_s20 = sphi %s1480_s20, %s1942_s20   ;;  %s1424_s19 = sphi %s1478_s19, %s1941_s19   ;;  %s1420_s18 = sphi %s1476_s18, %s1940_s18   ;;  %s1416_s17 = sphi %s1474_s17, %s1939_s17   ;;  %s1412_s16 = sphi %s1472_s16, %s1938_s16   ;;  %s1408_s15 = sphi %s1470_s15, %s1937_s15  }
   0x6   : > { %s26_s25 = sadd.s32 1, %s1428_s20  ;;  %s29_s26 = sadd.s32 1, %s1432_s21 }
   0x7   : > { %p27_p0 = scmp.ge.s32.totalorder %s26_s25, 2  ;;  %p146_p1 = scmp.ne.s32.totalorder %s1416_s17, %s1412_s16 }
   0x8   : > { %p147_p2 = scmp.eq.s32.totalorder %s1151_s23, 3  ;;  %p152_p5 = scmp.ne.s32.totalorder %s1412_s16, %s1408_s15 }
   0x9   : > { %s1945_s25 = smov (%p27_p0, %s26_s25), 0  ;;  %s1947_s26 = smov (!%p27_p0, %s29_s26), %s1432_s21 }
   0xa   : > { %s132_s27 = ssub.s32 %s1428_s20, %s1945_s25  ;;  %p1521_p3 = por %p147_p2, %p146_p1 }
   0xb   : > { %p31_p4 = scmp.ge.s32.totalorder %s1947_s26, 2  ;;  %p153_p6 = scmp.eq.s32.totalorder %s1152_s24, 3 }
   0xc   : > { %p1155_p7 = scmp.ge.s32.totalorder %s1436_s22, 1  ;;  %p215_p9 = scmp.lt.s32.totalorder %s1436_s22, 5 }
   0xd   : > { %s1949_s26 = smov (%p31_p4, %s1947_s26), 0  ;;  %p1530_p8 = por %p153_p6, %p152_p5 }
   0xe   : > { %s131_s30 = ssub.s32 %s1432_s21, %s1949_s26  ;;  %s136_s5 = sadd.s32 1, %s1416_s17 }
   0xf   : > { %s133_s6 = sor.u32 %s132_s27, %s131_s30  ;;  %p216_p10 = pnand %p1155_p7, %p215_p9 }
  0x10   : > { %p134_p11 = scmp.eq.s32.totalorder %s133_s6, 0  ;;  %s1157_s8 = sshll.u32 (!%p216_p10), %s1420_s18, 3 }
  0x11   : > { %219 = sbr.rel (%p216_p10) target bundleno = 573 (0x23d), region = 36  ;;  %p267_p12 = scmp.lt.s32.totalorder (!%p216_p10), %s1424_s19, 1 }
  0x12   : > { %s1539_s7 = scalar_select %p134_p11, %s1416_s17, %s136_s5  }
  0x13   : > { %p269_p13 = scmp.lt.s32.totalorder (!%p216_p10), %s1157_s8, 17  ;;  %s1159_s12 = sshll.u32 (!%p216_p10), %s1420_s18, 1 }
  0x14   : > { %p285_p0 = scmp.lt.s32.totalorder (!%p216_p10), %s1159_s12, 3  ;;  %s1438_s5 = smov (!%p216_p10), 4  }
  0x15   : > { %s1440_s24 = smov (!%p216_p10), 24   ;;  %s1194_s23 = sshll.u32 (!%p216_p10), %s1420_s18, 2 }
  0x16   : > { %s268_s9 = scalar_select %p267_p12, %s1424_s19, 1  ;;  %vm469_vm0 = vcmask 31744   ;;  %vm518_vm1 = vcmask 64512   ;;  %v1341_v30 = vld [vmem:[%s1932_s2 + $0x10] ss:$0 sps:$4 sm:$0x33]  }
  0x17   : > { %s1951_s8 = smov (!%p269_p13, %s1157_s8), 17  ;;  %s1953_s12 = smov (!%p285_p0, %s1159_s12), 3  ;;  %vm783_vm2 = vcmask 1041408   ;;  %vm664_vm3 = vcmask 1046528   ;;  %vm551_vm4 = vsmask.f32 7424 }
  0x18   : > { %s1241_s10 = smul.u32 54, %s268_s9  ;;  %1238 = vmatprep.subr.msk.bf16.mxu0 %vm783_vm2, %v1341_v30  ;;  %1239 = vmatprep.subr.msk.bf16.mxu1 %vm783_vm2, %v1341_v30  ;;  %v785_v34 = vsel %vm783_vm2, %v1341_v30, 0  ;;  %vm705_vm5 = vcmask 97280   ;;  %vm722_vm6 = vcmask 195584   ;;  %vm766_vm7 = vcmask 293888  }
  0x19   : > { %s1240_s11 = smul.u32 3, %s1951_s8  ;;  %1211 = vmatpush3.bf16.msra.mxu0 %v785_v34  ;;  %1235 = vmatpush3.bf16.msra.mxu1 %v785_v34  ;;  %vm1024_vm8 = vcmask 60416  }
  0x1a   : > { %s1243_s30 = smul.u32 12, %s268_s9 }
  0x1b   : > { %s273_s13 = sadd.s32 %s1241_s10, %s1240_s11  ;;  %s1242_s6 = smul.u32 3, %s1953_s12 }
  0x1c   : > { %s1158_s14 = sshll.u32 %s273_s13, 2  ;;  %s1439_s10 = smov 8  }
  0x1d   : > { %s1548_s27 = scalar_lea.vmem %s1930_s0, %s1158_s14  ;;  %s289_s8 = sadd.s32 %s1243_s30, %s1242_s6 }
  0x1e   : > { %v1551_v0 = vld [vmem:[%s1548_s27 + $0x18] sm:$0xff]   ;;  %v1554_v1 = vld [vmem:[%s1548_s27 + $0xc] sm:$0xff]   ;;  %v1571_v4 = vld [vmem:[%s1548_s27 + $0x44] ss:$0 sps:$4 sm:$0x11]   ;;  %s1160_s9 = sshll.u32 %s289_s8, 2 }
  0x1f   : > { %401 = vrot.lane.b32.xlu1 %v1551_v0, %s1438_s5  ;;  %v1559_v2 = vld [vmem:[%s1548_s27 + $0x48] sm:$0xff]   ;;  %397 = vrot.lane.b32.xlu0 %v1554_v1, %s1438_s5  ;;  %v1564_v3 = vld [vmem:[%s1548_s27 + $0x3c] sm:$0xff]   ;;  %s1581_s13 = scalar_lea.vmem %s1931_s1, %s1160_s9  ;;  %s1441_s9 = smov 12  }
  0x20   : > { %v1576_v5 = vld [vmem:[%s1548_s27 + $0x14] ss:$0 sps:$4 sm:$0x11]   ;;  %v1593_v7 = vld [vmem:[%s1548_s27 + $0x24] sm:$0xff]   ;;  %v1335_v14 = vld [vmem:[%s1581_s13 + $0xc] sm:$0xff]   ;;  %s258_s12 = sand.u32 1, %s1412_s16  }
  0x21   : > { %v1588_v6 = vld [vmem:[%s1548_s27 + $0x54] sm:$0xff]   ;;  %v1598_v8 = vld [vmem:[%s1548_s27 + $0x50] ss:$0 sps:$4 sm:$0x11]   ;;  %v1333_v12 = vld [vmem:[%s1581_s13] sm:$0xff]   ;;  %s1443_s11 = smov [#allocation2]  }
  0x22   : > { %v1603_v9 = vld [vmem:[%s1548_s27 + $0x20] ss:$0 sps:$4 sm:$0x11]   ;;  %v1612_v10 = vld [vmem:[%s1548_s27 + $0x5c] ss:$0 sps:$4 sm:$0x11]  }
  0x23   : > { %417 = vrot.lane.b32.xlu1 %v1559_v2, %s1438_s5  ;;  %413 = vrot.lane.b32.xlu0 %v1564_v3, %s1438_s5  ;;  %v1617_v11 = vld [vmem:[%s1548_s27 + $0x2c] ss:$0 sps:$4 sm:$0x11]   ;;  %v1334_v13 = vld [vmem:[%s1548_s27 + $0x30] sm:$0xff]  }
  0x24   : > { %v1336_v15 = vld [vmem:[%s1581_s13 + $0x8] ss:$0 sps:$4 sm:$0x11]   ;;  %v1337_v16 = vld [vmem:[%s1548_s27 + $0x38] ss:$0 sps:$4 sm:$0x11]  }
  0x25   : > { %v1338_v17 = vld [vmem:[%s1581_s13 + $0x14] ss:$0 sps:$4 sm:$0x11]   ;;  %v1339_v28 = vld [vmem:[%s1548_s27] sm:$0xff]   ;;  %s1156_s13 = sshll.u32 %s258_s12, 4 }
  0x26   : > { %v1340_v31 = vld [vmem:[%s1548_s27 + $0x8] ss:$0 sps:$4 sm:$0x11]   ;;  %s260_s14 = scalar_lea.vmem [#allocation2], %s1156_s13  ;;  %s1348_s13 = sshll.u32 %s1443_s11, 4  ;;  %s1349_s13 = int_to_ptr.vmem [resolvable:$false] %s1348_s13 }
  0x27   : > { %453 = vrot.lane.b32.xlu1 %v1559_v2, %s1439_s10  ;;  %437 = vrot.lane.b32.xlu0 %v1551_v0, %s1439_s10  ;;  %s1045_s6 = sshll.u32 %s260_s14, 4  ;;  %s1872_s6 = int_to_ptr.vmem [resolvable:$true] %s1045_s6 }
  0x28   : > { %p1351_p5 = scmp.lt.s32.totalorder %s1872_s6, %s1349_s13 }
  0x2b   : > { %415 = vrot.lane.b32.xlu1 %v1571_v4, %s1438_s5  ;;  %399 = vrot.lane.b32.xlu0 %v1576_v5, %s1438_s5 }
  0x2f   : > { %457 = vrot.lane.b32.xlu1 %v1588_v6, %s1439_s10  ;;  %441 = vrot.lane.b32.xlu0 %v1593_v7, %s1439_s10 }
  0x33   : > { %419 = vrot.lane.b32.xlu1 %v1598_v8, %s1438_s5  ;;  %403 = vrot.lane.b32.xlu0 %v1603_v9, %s1438_s5 }
  0x37   : > { %455 = vrot.lane.b32.xlu1 %v1598_v8, %s1439_s10  ;;  %439 = vrot.lane.b32.xlu0 %v1603_v9, %s1439_s10 }
  0x3b   : > { %459 = vrot.lane.b32.xlu1 %v1612_v10, %s1439_s10  ;;  %443 = vrot.lane.b32.xlu0 %v1617_v11, %s1439_s10 }
  0x3f   : > { %421 = vrot.lane.b32.xlu1 %v1588_v6, %s1438_s5  ;;  %405 = vrot.lane.b32.xlu0 %v1593_v7, %s1438_s5 }
  0x43   : > { %425 = vrot.lane.b32.xlu1 %v1333_v12, %s1438_s5  ;;  %409 = vrot.lane.b32.xlu0 %v1334_v13, %s1438_s5 }
  0x47   : > { %461 = vrot.lane.b32.xlu1 %v1333_v12, %s1439_s10  ;;  %445 = vrot.lane.b32.xlu0 %v1334_v13, %s1439_s10 }
  0x4b   : > { %423 = vrot.lane.b32.xlu1 %v1612_v10, %s1438_s5  ;;  %407 = vrot.lane.b32.xlu0 %v1617_v11, %s1438_s5 }
  0x4f   : > { %465 = vrot.lane.b32.xlu1 %v1335_v14, %s1439_s10  ;;  %449 = vrot.lane.b32.xlu0 %v1564_v3, %s1439_s10 }
  0x53   : > { %427 = vrot.lane.b32.xlu1 %v1336_v15, %s1438_s5  ;;  %411 = vrot.lane.b32.xlu0 %v1337_v16, %s1438_s5 }
  0x57   : > { %463 = vrot.lane.b32.xlu1 %v1336_v15, %s1439_s10  ;;  %447 = vrot.lane.b32.xlu0 %v1337_v16, %s1439_s10 }
  0x5b   : > { %467 = vrot.lane.b32.xlu1 %v1338_v17, %s1439_s10  ;;  %451 = vrot.lane.b32.xlu0 %v1571_v4, %s1439_s10  ;;  %s1344_s10 = scalar_lea.vmem %s1872_s6, 256 }
  0x5c   : > { %p1345_p1 = scmp.ne.s32.totalorder %s1872_s6, %s1344_s10 }
  0x5e   : > { %p1346_p2 = pnand %p1345_p1, %p1521_p3 }
  0x60   : > { %p1347_p4 = pneg %p1346_p2 }
  0x91   : > { %v402_v18 = vpop.permute.xlu1 %401  ;;  %v398_v19 = vpop.permute.xlu0 %397 }
  0x92   : > { %v472_v35 = vsel %vm469_vm0, %v1339_v28, %v398_v19  ;;  %v478_v47 = vsel %vm469_vm0, %v1554_v1, %v402_v18  ;;  %v1342_v19 = vld [vmem:[%s1932_s2 + $0x8] sm:$0xff]  }
  0x93   : > { %1212 = vmatprep.subr.bf16.mxu0 %v1342_v19  ;;  %1233 = vmatprep.subr.bf16.mxu1 %v1342_v19 }
  0x94   : > { %1213 = vmatpush3.bf16.msra.mxu0 %v1342_v19  ;;  %1236 = vmatpush3.bf16.msra.mxu1 %v1342_v19 }
  0x95   : > { %v418_v20 = vpop.permute.xlu1 %417  ;;  %v414_v21 = vpop.permute.xlu0 %413 }
  0x96   : > { %v496_v33 = vsel %vm469_vm0, %v1334_v13, %v414_v21  ;;  %v502_v43 = vsel %vm469_vm0, %v1564_v3, %v418_v20 }
  0x99   : > { %v454_v22 = vpop.permute.xlu1 %453  ;;  %v438_v23 = vpop.permute.xlu0 %437 }
  0x9a   : > { %v1659_v36 = vsel %vm518_vm1, %v496_v33, %v454_v22  ;;  %v1662_v37 = vsel %vm518_vm1, %v472_v35, %v438_v23 }
  0x9b   : > { %v677_v44 = vrot.slane %v1659_v36, 1  ;;  %v665_v48 = vrot.slane %v1662_v37, 1  ;;  %v594_v21 = vshll.u32 %v1659_v36, 16  ;;  %v554_v22 = vshll.u32 %v1662_v37, 16 }
  0x9c   : > { %v552_v33 = vshrl.u32 %v1662_v37, 16 }
  0x9d   : > { %v416_v24 = vpop.permute.xlu1 %415  ;;  %v400_v25 = vpop.permute.xlu0 %399  ;;  %v556_v34 = vrot.slane %v554_v22, 1 }
  0x9e   : > { %v499_v38 = vsel %vm469_vm0, %v1337_v16, %v416_v24  ;;  %v475_v40 = vsel %vm469_vm0, %v1340_v31, %v400_v25  ;;  %v1343_v25 = vld [vmem:[%s1932_s2] sm:$0xff]  }
  0x9f   : > { %1214 = vmatprep.subr.bf16.mxu0 %v1343_v25  ;;  %1234 = vmatprep.subr.bf16.mxu1 %v1343_v25 }
  0xa0   : > { %1215 = vmatpush3.bf16.msra.mxu0 %v1343_v25  ;;  %1237 = vmatpush3.bf16.msra.mxu1 %v1343_v25 }
  0xa1   : > { %v458_v26 = vpop.permute.xlu1 %457  ;;  %v442_v27 = vpop.permute.xlu0 %441 }
  0xa2   : > { %v1680_v49 = vsel %vm518_vm1, %v502_v43, %v458_v26  ;;  %v1684_v51 = vsel %vm518_vm1, %v478_v47, %v442_v27  ;;  %v592_v26 = vshrl.u32 %v1659_v36, 16 }
  0xa3   : > { %v680_v59 = vrot.slane %v1680_v49, 1  ;;  %v668_v62 = vrot.slane %v1684_v51, 1 }
  0xa5   : > { %v420_v29 = vpop.permute.xlu1 %419  ;;  %v404_v32 = vpop.permute.xlu0 %403 }
  0xa6   : > { %v505_v52 = vsel %vm469_vm0, %v1571_v4, %v420_v29  ;;  %v481_v55 = vsel %vm469_vm0, %v1576_v5, %v404_v32  ;;  %v596_v29 = vrot.slane %v594_v21, 1 }
  0xa9   : > { %v456_v39 = vpop.permute.xlu1 %455  ;;  %v440_v42 = vpop.permute.xlu0 %439 }
  0xaa   : > { %v1667_v41 = vsel %vm518_vm1, %v499_v38, %v456_v39  ;;  %v1674_v46 = vsel %vm518_vm1, %v475_v40, %v440_v42  ;;  %v604_v39 = vshll.u32 %v1680_v49, 16 }
  0xab   : > { %v678_v45 = vrot.slane %v1667_v41, 1  ;;  %v666_v50 = vrot.slane %v1674_v46, 1  ;;  %v598_v27 = vshll.u32 %v1667_v41, 16  ;;  %v558_v30 = vshll.u32 %v1674_v46, 16 }
  0xad   : > { %v460_v53 = vpop.permute.xlu1 %459  ;;  %v679_v54 = vsel %vm664_vm3, %v677_v44, %v678_v45  ;;  %v444_v57 = vpop.permute.xlu0 %443  ;;  %v667_v58 = vsel %vm664_vm3, %v665_v48, %v666_v50  ;;  %v600_v43 = vrot.slane %v598_v27, 1  ;;  %v597_v50 = vor.u32 %v596_v29, %v592_v26 }
  0xae   : > { %v1692_v56 = vsel %vm518_vm1, %v505_v52, %v460_v53  ;;  %697 = vrot.lane.b32.xlu1 %v679_v54, %s1440_s24  ;;  %v1699_v61 = vsel %vm518_vm1, %v481_v55, %v444_v57  ;;  %689 = vrot.lane.b32.xlu0 %v667_v58, %s1440_s24  ;;  %v602_v52 = vshrl.u32 %v1680_v49, 16  ;;  %v557_v54 = vor.u32 %v556_v34, %v552_v33 }
  0xaf   : > { %v681_v60 = vrot.slane %v1692_v56, 1  ;;  %v669_v63 = vrot.slane %v1699_v61, 1  ;;  %v608_v53 = vshll.u32 %v1692_v56, 16  ;;  %v606_v55 = vrot.slane %v604_v39, 1 }
  0xb0   : > { %v562_v57 = vshrl.u32 %v1684_v51, 16  ;;  %v568_v58 = vshll.u32 %v1699_v61, 16  ;;  %v601_v56 = vsel %vm551_vm4, %v597_v50, %v600_v43 }
  0xb1   : > { %v422_v1 = vpop.permute.xlu1 %421  ;;  %v682_v3 = vsel %vm664_vm3, %v680_v59, %v681_v60  ;;  %v406_v4 = vpop.permute.xlu0 %405  ;;  %v670_v5 = vsel %vm664_vm3, %v668_v62, %v669_v63  ;;  %v607_v22 = vor.u32 %v606_v55, %v602_v52 }
  0xb2   : > { %699 = vrot.lane.b32.xlu1 %v682_v3, %s1440_s24  ;;  %691 = vrot.lane.b32.xlu0 %v670_v5, %s1440_s24  ;;  %v508_v28 = vsel %vm469_vm0, %v1559_v2, %v422_v1  ;;  %v484_v31 = vsel %vm469_vm0, %v1551_v0, %v406_v4  ;;  %v564_v0 = vshll.u32 %v1684_v51, 16 }
  0xb4   : > { %v566_v60 = vrot.slane %v564_v0, 1 }
  0xb5   : > { %v426_v12 = vpop.permute.xlu1 %425  ;;  %v1708_v13 = vpop.permute.xlu0 %409 }
  0xb6   : > { %v514_v62 = vsel %vm469_vm0, %v1588_v6, %v426_v12  ;;  %v490_v3 = vsel %vm469_vm0, %v1593_v7, %v1708_v13  ;;  %v610_v6 = vrot.slane %v608_v53, 1  ;;  %v567_v25 = vor.u32 %v566_v60, %v562_v57 }
  0xb8   : > { %v611_v27 = vsel %vm551_vm4, %v607_v22, %v610_v6 }
  0xb9   : > { %v462_v14 = vpop.permute.xlu1 %461  ;;  %v446_v15 = vpop.permute.xlu0 %445 }
  0xba   : > { %v1726_v32 = vsel %vm518_vm1, %v508_v28, %v462_v14  ;;  %v1730_v35 = vsel %vm518_vm1, %v484_v31, %v446_v15 }
  0xbb   : > { %v683_v44 = vrot.slane %v1726_v32, 1  ;;  %v671_v47 = vrot.slane %v1730_v35, 1  ;;  %v614_v63 = vshll.u32 %v1726_v32, 16  ;;  %v574_v61 = vshll.u32 %v1730_v35, 16 }
  0xbc   : > { %v572_v28 = vshrl.u32 %v1730_v35, 16 }
  0xbd   : > { %v424_v16 = vpop.permute.xlu1 %423  ;;  %v408_v17 = vpop.permute.xlu0 %407 }
  0xbe   : > { %v511_v2 = vsel %vm469_vm0, %v1598_v8, %v424_v16  ;;  %v487_v40 = vsel %vm469_vm0, %v1603_v9, %v408_v17  ;;  %v560_v8 = vrot.slane %v558_v30, 1  ;;  %v570_v17 = vrot.slane %v568_v58, 1 }
  0xc0   : > { %v561_v14 = vsel %vm551_vm4, %v557_v54, %v560_v8  ;;  %v571_v31 = vsel %vm551_vm4, %v567_v25, %v570_v17 }
  0xc1   : > { %v466_v18 = vpop.permute.xlu1 %465  ;;  %v450_v20 = vpop.permute.xlu0 %449 }
  0xc2   : > { %v1759_v4 = vsel %vm518_vm1, %v514_v62, %v466_v18  ;;  %v1763_v12 = vsel %vm518_vm1, %v490_v3, %v450_v20  ;;  %v616_v18 = vrot.slane %v614_v63, 1 }
  0xc3   : > { %v624_v21 = vshll.u32 %v1759_v4, 16  ;;  %v622_v39 = vshrl.u32 %v1759_v4, 16  ;;  %v686_v50 = vrot.slane %v1759_v4, 1  ;;  %v674_v52 = vrot.slane %v1763_v12, 1 }
  0xc5   : > { %v428_v23 = vpop.permute.xlu1 %427  ;;  %v412_v24 = vpop.permute.xlu0 %411  ;;  %v626_v33 = vrot.slane %v624_v21, 1 }
  0xc6   : > { %v517_v15 = vsel %vm469_vm0, %v1612_v10, %v428_v23  ;;  %v493_v7 = vsel %vm469_vm0, %v1617_v11, %v412_v24  ;;  %v576_v10 = vrot.slane %v574_v61, 1  ;;  %v584_v23 = vshll.u32 %v1763_v12, 16 }
  0xc7   : > { %v612_v11 = vshrl.u32 %v1726_v32, 16 }
  0xc9   : > { %v464_v38 = vpop.permute.xlu1 %463  ;;  %v448_v42 = vpop.permute.xlu0 %447  ;;  %v617_v34 = vor.u32 %v616_v18, %v612_v11  ;;  %v911_v11 = vlaneseq }
  0xca   : > { %v546_v41 = vsel %vm518_vm1, %v511_v2, %v464_v38  ;;  %v530_v46 = vsel %vm518_vm1, %v487_v40, %v448_v42  ;;  %v586_v2 = vrot.slane %v584_v23, 1  ;;  %v577_v38 = vor.u32 %v576_v10, %v572_v28 }
  0xcb   : > { %v684_v45 = vrot.slane %v546_v41, 1  ;;  %v672_v48 = vrot.slane %v530_v46, 1  ;;  %v618_v16 = vshll.u32 %v546_v41, 16  ;;  %v578_v13 = vshll.u32 %v530_v46, 16 }
  0xcc   : > { %v582_v41 = vshrl.u32 %v1763_v12, 16  ;;  %v1442_v23 = vmov 1966171168   ;;  %v912_v28 = vshrl.u32 %v911_v11, 7 }
  0xcd   : > { %v685_v9 = vsel %vm664_vm3, %v683_v44, %v684_v45  ;;  %v673_v59 = vsel %vm664_vm3, %v671_v47, %v672_v48  ;;  %v468_v1 = vpop.permute.xlu1 %467  ;;  %v452_v5 = vpop.permute.xlu0 %451  ;;  %v620_v24 = vrot.slane %v618_v16, 1  ;;  %v580_v29 = vrot.slane %v578_v13, 1 }
  0xce   : > { %701 = vrot.lane.b32.xlu1 %v685_v9, %s1440_s24  ;;  %693 = vrot.lane.b32.xlu0 %v673_v59, %s1440_s24  ;;  %v550_v19 = vsel %vm518_vm1, %v517_v15, %v468_v1  ;;  %v534_v20 = vsel %vm518_vm1, %v493_v7, %v452_v5  ;;  %v627_v44 = vor.u32 %v626_v33, %v622_v39  ;;  %v909_v25 = vunpack.c.l.s4 %v1442_v23 }
  0xcf   : > { %v628_v26 = vshll.u32 %v550_v19, 16  ;;  %v588_v30 = vshll.u32 %v534_v20, 16  ;;  %v621_v40 = vsel %vm551_vm4, %v617_v34, %v620_v24  ;;  %v581_v43 = vsel %vm551_vm4, %v577_v38, %v580_v29 }
  0xd0   : > { %v587_v45 = vor.u32 %v586_v2, %v582_v41  ;;  %v687_v46 = vrot.slane %v550_v19, 1  ;;  %v675_v47 = vrot.slane %v534_v20, 1 }
  0xd1   : > { %v630_v0 = vrot.slane %v628_v26, 1  ;;  %v590_v42 = vrot.slane %v588_v30, 1 }
  0xd2   : > { %640 = vrot.lane.b32.xlu1 %v601_v56, %s1441_s9  ;;  %632 = vrot.lane.b32.xlu0 %v561_v14, %s1441_s9  ;;  %v688_v53 = vsel %vm664_vm3, %v686_v50, %v687_v46  ;;  %v676_v9 = vsel %vm664_vm3, %v674_v52, %v675_v47 }
  0xd3   : > { %v631_v8 = vsel %vm551_vm4, %v627_v44, %v630_v0  ;;  %v591_v48 = vsel %vm551_vm4, %v587_v45, %v590_v42 }
  0xd6   : > { %642 = vrot.lane.b32.xlu1 %v611_v27, %s1441_s9  ;;  %634 = vrot.lane.b32.xlu0 %v571_v31, %s1441_s9  ;;  %v910_v27 = vunpack.c.0.s8 %v909_v25 }
  0xd8   : > { %v1838_v39 = vsub.s32 %v910_v27, %v912_v28 }
  0xda   : > { %644 = vrot.lane.b32.xlu1 %v621_v40, %s1441_s9  ;;  %636 = vrot.lane.b32.xlu0 %v581_v43, %s1441_s9 }
  0xde   : > { %646 = vrot.lane.b32.xlu1 %v631_v8, %s1441_s9  ;;  %638 = vrot.lane.b32.xlu0 %v591_v48, %s1441_s9  ;;  %s1878_s9 = scalar_lea.sflag [#allocation3], %s258_s12 }
  0xe2   : > { %703 = vrot.lane.b32.xlu1 %v688_v53, %s1440_s24  ;;  %695 = vrot.lane.b32.xlu0 %v676_v9, %s1440_s24  ;;  %s1195_s24 = sshll.u32 %s1424_s19, 3 }
  0xe3   : > { %s1042_s27 = sadd.s32 %s1195_s24, %s1194_s23  ;;  %s1350_s23 = scalar_lea.vmem %s1349_s13, 512 }
  0xe4   : > { %s1196_s30 = sshll.u32 %s1042_s27, 6  ;;  %p1352_p6 = scmp.lt.s32.totalorder %s1350_s23, %s1344_s10 }
  0xe5   : > { %s1870_s8 = scalar_lea.hbm %s1934_s4, %s1196_s30 }
  0xe6   : > { %p1353_p7 = por %p1352_p6, %p1351_p5 }
  0xe8   : > { %p1354_p9 = pnand %p1353_p7, %p1347_p4 }
 0x120   : > { %v698_v54 = vpop.permute.xlu1 %697  ;;  %v690_v55 = vpop.permute.xlu0 %689 }
 0x124   : > { %v700_v57 = vpop.permute.xlu1 %699  ;;  %v692_v58 = vpop.permute.xlu0 %691 }
 0x140   : > { %v702_v59 = vpop.permute.xlu1 %701  ;;  %v694_v60 = vpop.permute.xlu0 %693 }
 0x144   : > { %v641_v62 = vpop.permute.xlu1 %640  ;;  %v633_v1 = vpop.permute.xlu0 %632 }
 0x145   : > { %v715_v63 = vsel %vm705_vm5, %v1659_v36, %v641_v62  ;;  %v707_v56 = vsel %vm705_vm5, %v1662_v37, %v633_v1 }
 0x146   : > { %v732_v3 = vsel %vm722_vm6, %v715_v63, %v698_v54  ;;  %v724_v61 = vsel %vm722_vm6, %v707_v56, %v690_v55 }
 0x147   : > { %1224 = vmatprep.mubr.msk.bf16.mxu1 %vm766_vm7, %v732_v3  ;;  %1216 = vmatprep.mubr.msk.bf16.mxu0 %vm766_vm7, %v724_v61 }
 0x148   : > { %v643_v5 = vpop.permute.xlu1 %642  ;;  %v635_v6 = vpop.permute.xlu0 %634 }
 0x149   : > { %v717_v14 = vsel %vm705_vm5, %v1680_v49, %v643_v5  ;;  %v709_v36 = vsel %vm705_vm5, %v1684_v51, %v635_v6 }
 0x14a   : > { %v734_v15 = vsel %vm722_vm6, %v717_v14, %v700_v57  ;;  %v726_v37 = vsel %vm722_vm6, %v709_v36, %v692_v58 }
 0x14b   : > { %1225 = vmatmul.mubr.msk.bf16.vlgmr.msra.gmra.mxu1 %vm766_vm7, %v734_v15  ;;  %1217 = vmatmul.mubr.msk.bf16.vlgmr.msra.gmra.mxu0 %vm766_vm7, %v726_v37 }
 0x14c   : > { %v645_v16 = vpop.permute.xlu1 %644  ;;  %v637_v7 = vpop.permute.xlu0 %636 }
 0x14d   : > { %v719_v17 = vsel %vm705_vm5, %v1726_v32, %v645_v16  ;;  %v711_v49 = vsel %vm705_vm5, %v1730_v35, %v637_v7 }
 0x14e   : > { %v736_v13 = vsel %vm722_vm6, %v719_v17, %v702_v59  ;;  %v728_v51 = vsel %vm722_vm6, %v711_v49, %v694_v60 }
 0x14f   : > { %1228 = vmatprep.mubr.msk.bf16.mxu1 %vm766_vm7, %v736_v13  ;;  %1220 = vmatprep.mubr.msk.bf16.mxu0 %vm766_vm7, %v728_v51 }
 0x150   : > { %v647_v19 = vpop.permute.xlu1 %646  ;;  %v639_v18 = vpop.permute.xlu0 %638 }
 0x151   : > { %v721_v21 = vsel %vm705_vm5, %v1759_v4, %v647_v19  ;;  %v713_v32 = vsel %vm705_vm5, %v1763_v12, %v639_v18  ;;  %v1832_v4 = vld [vmem:[%s1933_s3] ss:$0 sm:$0xff] }
 0x154   : > { %v704_v20 = vpop.permute.xlu1 %703  ;;  %v696_v35 = vpop.permute.xlu0 %695 }
 0x155   : > { %v738_v22 = vsel %vm722_vm6, %v721_v21, %v704_v20  ;;  %v730_v10 = vsel %vm722_vm6, %v713_v32, %v696_v35 }
 0x156   : > { %1229 = vmatmul.mubr.msk.bf16.gmra.mxu1 %vm766_vm7, %v738_v22  ;;  %1221 = vmatmul.mubr.msk.bf16.gmra.mxu0 %vm766_vm7, %v730_v10 }
 0x20b   : > { %v1226_v24 = vpop.f32.mrf.mxu1  ;;  %v1218_v26 = vpop.f32.mrf.mxu0 }
 0x20c   : > { %v862_v12 = vadd.f32 %v1226_v24, %v1832_v4  ;;  %v830_v29 = vadd.f32 %v1218_v26, %v1832_v4 }
 0x20d   : > { %v853_v30 = vpop.f32.mrf.mxu1  ;;  %v821_v31 = vpop.f32.mrf.mxu0 }
 0x20e   : > { %v854_v33 = vadd.f32 %v1832_v4, %v853_v30  ;;  %v822_v34 = vadd.f32 %v1832_v4, %v821_v31  ;;  %v894_v38 = vmax.f32 %v862_v12, 0.0  ;;  %v886_v42 = vmax.f32 %v830_v29, 0.0 }
 0x20f   : > { %v1227_v2 = vpop.f32.mrf.mxu1  ;;  %v1219_v40 = vpop.f32.mrf.mxu0 }
 0x210   : > { %v892_v0 = vmax.f32 %v854_v33, 0.0  ;;  %v865_v41 = vadd.f32 %v1227_v2, %v1832_v4  ;;  %v884_v43 = vmax.f32 %v822_v34, 0.0  ;;  %v833_v44 = vadd.f32 %v1219_v40, %v1832_v4 }
 0x211   : > { %v856_v45 = vpop.f32.mrf.mxu1  ;;  %v824_v8 = vpop.f32.mrf.mxu0 }
 0x212   : > { %v904_v46 = vadd.f32 %v894_v38, %v892_v0  ;;  %v857_v47 = vadd.f32 %v1832_v4, %v856_v45  ;;  %v900_v48 = vadd.f32 %v886_v42, %v884_v43  ;;  %v825_v50 = vadd.f32 %v1832_v4, %v824_v8 }
 0x213   : > { %v895_v53 = vmax.f32 %v865_v41, 0.0  ;;  %v887_v55 = vmax.f32 %v833_v44, 0.0 }
 0x214   : > { %v942_v52 = vrot.slane %v904_v46, %v1838_v39  ;;  %v893_v9 = vmax.f32 %v857_v47, 0.0  ;;  %v914_v54 = vrot.slane %v900_v48, %v1838_v39  ;;  %v885_v57 = vmax.f32 %v825_v50, 0.0 }
 0x216   : > { %v976_v58 = vrot.slane %v942_v52, 4  ;;  %v905_v59 = vadd.f32 %v895_v53, %v893_v9  ;;  %v1230_v60 = vpop.f32.mrf.mxu1  ;;  %v972_v62 = vrot.slane %v914_v54, 4  ;;  %v901_v63 = vadd.f32 %v887_v55, %v885_v57  ;;  %v1222_v1 = vpop.f32.mrf.mxu0 }
 0x217   : > { %v878_v56 = vadd.f32 %v1230_v60, %v1832_v4  ;;  %v846_v61 = vadd.f32 %v1222_v1, %v1832_v4 }
 0x218   : > { %v949_v3 = vrot.slane %v905_v59, %v1838_v39  ;;  %v869_v5 = vpop.f32.mrf.mxu1  ;;  %v992_v14 = vadd.f32 %v976_v58, %v942_v52  ;;  %v921_v6 = vrot.slane %v901_v63, %v1838_v39  ;;  %v837_v36 = vpop.f32.mrf.mxu0  ;;  %v988_v37 = vadd.f32 %v972_v62, %v914_v54 }
 0x219   : > { %v870_v15 = vadd.f32 %v1832_v4, %v869_v5  ;;  %v838_v17 = vadd.f32 %v1832_v4, %v837_v36  ;;  %v898_v13 = vmax.f32 %v878_v56, 0.0  ;;  %v890_v20 = vmax.f32 %v846_v61, 0.0 }
 0x21a   : > { %v977_v16 = vrot.slane %v949_v3, 4  ;;  %v1231_v7 = vpop.f32.mrf.mxu1  ;;  %v973_v49 = vrot.slane %v921_v6, 4  ;;  %v1223_v19 = vpop.f32.mrf.mxu0  ;;  %v1000_v10 = vmul.f32 0.25, %v992_v14  ;;  %v996_v26 = vmul.f32 0.25, %v988_v37 }
 0x21b   : > { %v896_v51 = vmax.f32 %v870_v15, 0.0  ;;  %v881_v18 = vadd.f32 %v1231_v7, %v1832_v4  ;;  %v888_v32 = vmax.f32 %v838_v17, 0.0  ;;  %v849_v22 = vadd.f32 %v1223_v19, %v1832_v4 }
 0x21c   : > { %v993_v21 = vadd.f32 %v977_v16, %v949_v3  ;;  %v872_v35 = vpop.f32.mrf.mxu1  ;;  %v989_v23 = vadd.f32 %v973_v49, %v921_v6  ;;  %v840_v11 = vpop.f32.mrf.mxu0 }
 0x21d   : > { %v906_v25 = vadd.f32 %v898_v13, %v896_v51  ;;  %v873_v24 = vadd.f32 %v1832_v4, %v872_v35  ;;  %v902_v27 = vadd.f32 %v890_v20, %v888_v32  ;;  %v841_v28 = vadd.f32 %v1832_v4, %v840_v11 }
 0x21e   : > { %v1001_v12 = vmul.f32 0.25, %v993_v21  ;;  %v997_v29 = vmul.f32 0.25, %v989_v23  ;;  %v899_v31 = vmax.f32 %v881_v18, 0.0  ;;  %v891_v38 = vmax.f32 %v849_v22, 0.0 }
 0x21f   : > { %v956_v30 = vrot.slane %v906_v25, %v1838_v39  ;;  %v897_v33 = vmax.f32 %v873_v24, 0.0  ;;  %v928_v2 = vrot.slane %v902_v27, %v1838_v39  ;;  %v889_v0 = vmax.f32 %v841_v28, 0.0 }
 0x220   : > { %v1014_v34 = vcombine.low %v1000_v10, %v1001_v12  ;;  %v1012_v40 = vcombine.low %v996_v26, %v997_v29 }
 0x221   : > { %v978_v41 = vrot.slane %v956_v30, 4  ;;  %v907_v42 = vadd.f32 %v899_v31, %v897_v33  ;;  %v974_v44 = vrot.slane %v928_v2, 4  ;;  %v903_v45 = vadd.f32 %v891_v38, %v889_v0 }
 0x222   : > { %v1022_v43 = vpack.c.bf16 %v1014_v34, %v1014_v34  ;;  %v1020_v4 = vpack.c.bf16 %v1012_v40, %v1012_v40 }
 0x223   : > { %v963_v46 = vrot.slane %v907_v42, %v1838_v39  ;;  %v935_v8 = vrot.slane %v903_v45, %v1838_v39  ;;  %v994_v47 = vadd.f32 %v978_v41, %v956_v30  ;;  %v990_v50 = vadd.f32 %v974_v44, %v928_v2 }
 0x224   : > { %1027 = vst.msk [vmem:[%s260_s14 + $0x8] sm:$0xf] %vm1024_vm8, %v1022_v43  ;;  %1025 = vst.msk [vmem:[%s260_s14] sm:$0xf] %vm1024_vm8, %v1020_v4 }
 0x225   : > { %v979_v48 = vrot.slane %v963_v46, 4  ;;  %v975_v52 = vrot.slane %v935_v8, 4  ;;  %v1002_v54 = vmul.f32 0.25, %v994_v47  ;;  %v998_v57 = vmul.f32 0.25, %v990_v50 }
 0x227   : > { %v995_v53 = vadd.f32 %v979_v48, %v963_v46  ;;  %v991_v9 = vadd.f32 %v975_v52, %v935_v8 }
 0x229   : > { %v1003_v55 = vmul.f32 0.25, %v995_v53  ;;  %v999_v58 = vmul.f32 0.25, %v991_v9 }
 0x22b   : > { %v1015_v59 = vcombine.low %v1002_v54, %v1003_v55  ;;  %v1013_v39 = vcombine.low %v998_v57, %v999_v58 }
 0x22d   : > { %v1023_v60 = vpack.c.bf16 %v1015_v59, %v1015_v59  ;;  %v1021_v62 = vpack.c.bf16 %v1013_v39, %v1013_v39 }
 0x22f   : > { %1028 = vst.msk [vmem:[%s260_s14 + $0xc] sm:$0xf] %vm1024_vm8, %v1023_v60  ;;  %1026 = vst.msk [vmem:[%s260_s14 + $0x4] sm:$0xf] %vm1024_vm8, %v1021_v62 }
 0x230   : > { %1357 = shalt.err (!%p1354_p9)
}
 0x231   : > { %s1358_s12 = scalar_lea.hbm %s1870_s8, 256  ;;  %s1362_s27 = scalar_lea.hbm %s1934_s4, 1024 }
 0x232   : > { %p1359_p10 = scmp.ne.s32.totalorder %s1870_s8, %s1358_s12  ;;  %p1363_p13 = scmp.lt.s32.totalorder %s1870_s8, %s1934_s4 }
 0x233   : > { %p1364_p0 = scmp.lt.s32.totalorder %s1362_s27, %s1358_s12 }
 0x234   : > { %p1360_p11 = pnand %p1359_p10, %p1521_p3 }
 0x235   : > { %p1365_p1 = por %p1364_p0, %p1363_p13 }
 0x236   : > { %p1361_p12 = pneg %p1360_p11 }
 0x238   : > { %p1366_p2 = pnand %p1365_p1, %p1361_p12 }
 0x23a   : > { %1369 = shalt.err (!%p1366_p2)
}
 0x23b   : > { %s1444_s19 = smov 64  }
 0x23c   : > { %1244 = dma.vmem_to_hbm [thread:$0]  (%p1521_p3), %s1872_s6, 256, %s1870_s8, %s1878_s9, %s1444_s19, %s1444_s19, %s1438_s5  }
 0x23d PF: > { %p1250_p4 = scmp.ge.s32.totalorder %s1436_s22, 2  ;;  %s1060_s10 = sand.u32 1, %s1408_s15  }
 0x23e   : > { %s1061_s11 = scalar_lea.sflag [#allocation3], %s1060_s10 }
 0x23f   : > { %p1247_p5 = pnand %p1250_p4, %p1530_p8 }
 0x241   : > { %p1248_p6 = pneg %p1247_p5 }
 0x243   : > { %1403 = dma.done.wait (%p1248_p6), %s1061_s11, 256  }
 0x244   : > { %1405 = vsyncadd (%p1248_p6), %s1061_s11, 4294967040  ;;  %s17_s22 = sadd.s32 1, %s1436_s22   ;;  %s1937_s15 = smov %s1412_s16 }
 0x245   : > { %p14_p7 = scmp.ge.s32.totalorder %s17_s22, 6   ;;  %s1938_s16 = smov %s1416_s17 }
 0x246   : > { %s1939_s17 = smov %s1539_s7  ;;  %s1940_s18 = smov %s1428_s20 }
 0x247   : > { %s1941_s19 = smov %s1432_s21  ;;  %s1942_s20 = smov %s1945_s25 }
 0x248   : > { %s1943_s21 = smov %s1949_s26  ;;  %16 = sbr.rel (!%p14_p7) target bundleno = 5 (0x5), region = 74 }
 0x24d   :  { %1066 = vsyncpa [#allocation3], 1 }
 0x24e   :  { %1068 = vsyncpa [#allocation3 + $0x1], 1 }

</bundles_post_ra>
